<compile_context>
chip_gen: v7x
topology: tpu7x:2x2x1
jax: 0.10.0
libtpu: 0.0.40
codegen_flags: <defaults>
</compile_context>

<pallas_src>
import functools

import jax
import jax.numpy as jnp
from jax.experimental import pallas as pl
from jax.experimental.pallas import tpu as pltpu


def _round_up(x: int, m: int) -> int:
    return (x + m - 1) // m * m


# ----------------------------------------------------------------------------
# Kernel
# ----------------------------------------------------------------------------
def _residual_block_kernel(x_ref, w1_ref, b1_ref, wo_ref, bo_ref, lnw_ref, o_ref,
                           *, h_pad, eps, compute_dtype):
    # x tile: (block_b, in_dim) in VMEM, feature dim unpadded (MXU pads K).
    x = x_ref[...]

    # Fused first matmul: x @ [Wh | Wr] + [bh | br] -> (block_b, h_pad + out_dim)
    # Single MXU pass over x instead of two.
    t = jnp.dot(x.astype(compute_dtype), w1_ref[...],
                preferred_element_type=jnp.float32) + b1_ref[...]

    hid = jnp.maximum(t[:, :h_pad], 0.0)   # hidden_layer + ReLU (128-aligned slice)
    res = t[:, h_pad:]                     # residual_layer output (width = out_dim)

    # output_layer (dropout_p = 0.0 -> identity at inference) + residual add.
    out = jnp.dot(hid.astype(compute_dtype), wo_ref[...],
                  preferred_element_type=jnp.float32) + bo_ref[...] + res

    # T5LayerNorm: RMS norm (no mean subtraction, no bias), eps = 1e-6.
    # `out` has exactly out_dim lanes, so jnp.mean is the true mean.
    var = jnp.mean(out * out, axis=-1, keepdims=True)
    out = out * jax.lax.rsqrt(var + eps)
    o_ref[...] = (lnw_ref[...] * out).astype(o_ref.dtype)


# ----------------------------------------------------------------------------
# One-time weight packing (hoisted out of the per-call path)
# ----------------------------------------------------------------------------
def pack_residual_block_params(wh, bh, wo, bo, wr, br, lnw, *,
                               compute_dtype=jnp.float32):
    """Pack/pad weights once at load time.

    wh: (in_dim, h_dim)    bh: (h_dim,)     -- hidden_layer (transposed weight)
    wo: (h_dim, out_dim)   bo: (out_dim,)   -- output_layer
    wr: (in_dim, out_dim)  br: (out_dim,)   -- residual_layer
    lnw: (out_dim,)                         -- T5LayerNorm weight
    """
    in_dim, h_dim = wh.shape
    out_dim = wo.shape[1]
    f32 = jnp.float32

    # Pad only the hidden width to a 128-lane boundary so the in-kernel slice
    # between the hidden and residual halves is vreg-tile aligned.  The padded
    # hid lanes are relu(0+0)=0 and meet zero rows of Wo, so they are inert.
    h_pad = _round_up(h_dim, 128)

    wh_p = jnp.pad(wh.astype(f32), ((0, 0), (0, h_pad - h_dim)))
    w1 = jnp.concatenate([wh_p, wr.astype(f32)], axis=1).astype(compute_dtype)
    b1 = jnp.concatenate([
        jnp.pad(bh.astype(f32), (0, h_pad - h_dim)),
        br.astype(f32),
    ]).reshape(1, h_pad + out_dim)

    wo_p = jnp.pad(wo.astype(f32), ((0, h_pad - h_dim), (0, 0))).astype(compute_dtype)
    bo_2d = bo.astype(f32).reshape(1, out_dim)
    lnw_2d = lnw.astype(f32).reshape(1, out_dim)

    return dict(w1=w1, b1=b1, wo=wo_p, bo=bo_2d, lnw=lnw_2d,
                h_pad=h_pad, in_dim=in_dim, out_dim=out_dim,
                compute_dtype=compute_dtype)


def _choose_block_b(batch, block_b):
    """Pick a batch tile: multiple of 8, and >=2 grid steps whenever possible
    (software pipelining + both v7x TensorCores via the 'parallel' axis)."""
    block_b = max(8, block_b)
    if batch > 8:
        block_b = min(block_b, _round_up(pl.cdiv(batch, 2), 8))
    block_b = min(block_b, _round_up(batch, 8))
    return _round_up(block_b, 8)


# ----------------------------------------------------------------------------
# Forward
# ----------------------------------------------------------------------------
def residual_block(x, packed, *, block_b=1024, eps=1e-6, out_dtype=None):
    """ResidualBlock forward.  x: (B, in_dim); packed: pack_residual_block_params().

    Pass bf16 x (and read bf16 out) on v6e/v7x to halve activation HBM traffic;
    layer-norm math stays f32 inside the kernel either way.
    """
    B, in_dim = x.shape
    assert in_dim == packed["in_dim"]
    out_dim = packed["out_dim"]
    h_pad = packed["h_pad"]
    out_dtype = x.dtype if out_dtype is None else out_dtype

    block_b = _choose_block_b(B, block_b)
    grid_b = pl.cdiv(B, block_b)

    kernel = functools.partial(
        _residual_block_kernel,
        h_pad=h_pad, eps=eps, compute_dtype=packed["compute_dtype"])

    def const(shape):
        # whole-array block, resident across the batch grid
        return pl.BlockSpec(shape, lambda i: (0,) * len(shape))

    return pl.pallas_call(
        kernel,
        out_shape=jax.ShapeDtypeStruct((B, out_dim), out_dtype),
        grid_spec=pltpu.PrefetchScalarGridSpec(
            num_scalar_prefetch=0,
            grid=(grid_b,),
            in_specs=[
                pl.BlockSpec((block_b, in_dim), lambda i: (i, 0)),   # x tile
                const((in_dim, h_pad + out_dim)),                    # [Wh | Wr]
                const((1, h_pad + out_dim)),                         # [bh | br]
                const((h_pad, out_dim)),                             # Wo
                const((1, out_dim)),                                 # bo
                const((1, out_dim)),                                 # layer-norm weight
            ],
            # Ragged last block: out-of-bounds rows are computed from garbage
            # but never stored (masked) -- safe because everything is row-wise.
            out_specs=pl.BlockSpec((block_b, out_dim), lambda i: (i, 0)),
        ),
        compiler_params=pltpu.CompilerParams(
            dimension_semantics=("parallel",)),
    )(x, packed["w1"], packed["b1"], packed["wo"], packed["bo"], packed["lnw"])


# ----------------------------------------------------------------------------
# Pure-JAX reference
# ----------------------------------------------------------------------------
def residual_block_ref(x, wh, bh, wo, bo, wr, br, lnw, eps=1e-6):
    hid = jnp.maximum(x @ wh + bh, 0.0)
    out = hid @ wo + bo
    res = x @ wr + br
    out = out + res
    var = jnp.mean(out * out, axis=-1, keepdims=True)
    return lnw * (out * jax.lax.rsqrt(var + eps))


if __name__ == "__main__":
    # Small shapes consistent with the module (rows = batch x patches).
    B, in_dim, h_dim, out_dim = 200, 32, 96, 48

    key = jax.random.PRNGKey(0)
    kx, k1, k2, k3, k4, k5, k6 = jax.random.split(key, 7)

    x = jax.random.normal(kx, (B, in_dim), dtype=jnp.float32)

    # nn.Linear weights are (out, in); we store the transpose (in, out).
    wh = jax.random.normal(k1, (in_dim, h_dim), dtype=jnp.float32) * 0.1
    bh = jax.random.normal(k2, (h_dim,), dtype=jnp.float32) * 0.1
    wo = jax.random.normal(k3, (h_dim, out_dim), dtype=jnp.float32) * 0.1
    bo = jax.random.normal(k4, (out_dim,), dtype=jnp.float32) * 0.1
    wr = jax.random.normal(k5, (in_dim, out_dim), dtype=jnp.float32) * 0.1
    br = jax.random.normal(k6, (out_dim,), dtype=jnp.float32) * 0.1
    lnw = jnp.ones((out_dim,), dtype=jnp.float32)  # T5LayerNorm init = ones

    ref = residual_block_ref(x, wh, bh, wo, bo, wr, br, lnw)

    # --- f32 I/O + f32 MXU path: tight correctness check -------------------
    # B=200 with the default block_b gives block_b=104, grid=(2,): two tiles,
    # the second one ragged (masked stores).
    packed_f32 = pack_residual_block_params(
        wh, bh, wo, bo, wr, br, lnw, compute_dtype=jnp.float32)
    out_f32 = jax.block_until_ready(residual_block(x, packed_f32))
    assert out_f32.shape == (B, out_dim) and out_f32.dtype == jnp.float32
    assert jnp.allclose(out_f32, ref, atol=1e-4, rtol=1e-4), \
        float(jnp.max(jnp.abs(out_f32 - ref)))

    # --- bf16 I/O + bf16 MXU path (v6e/v7x fast path): loose check ----------
    packed_bf16 = pack_residual_block_params(
        wh, bh, wo, bo, wr, br, lnw, compute_dtype=jnp.bfloat16)
    out_bf16 = jax.block_until_ready(
        residual_block(x.astype(jnp.bfloat16), packed_bf16))
    assert out_bf16.shape == (B, out_dim) and out_bf16.dtype == jnp.bfloat16
    assert jnp.allclose(out_bf16.astype(jnp.float32), ref, atol=1e-1, rtol=1e-1), \
        float(jnp.max(jnp.abs(out_bf16.astype(jnp.float32) - ref)))

    print("KERNEL_OK")
</pallas_src>

<mosaic_0001>
module attributes {stable_mosaic.version = 11 : i64} {
  func.func @_residual_block_kernel(%arg0: i32, %arg1: memref<104x32xf32, #tpu.memory_space<vmem>>, %arg2: memref<32x176xf32, #tpu.memory_space<vmem>>, %arg3: memref<1x176xf32, #tpu.memory_space<vmem>>, %arg4: memref<128x48xf32, #tpu.memory_space<vmem>>, %arg5: memref<1x48xf32, #tpu.memory_space<vmem>>, %arg6: memref<1x48xf32, #tpu.memory_space<vmem>>, %arg7: memref<104x48xf32, #tpu.memory_space<vmem>>) attributes {dimension_semantics = [#tpu.dimension_semantics<parallel>], iteration_bounds = array<i64: 2>, scalar_prefetch = 0 : i64, scratch_operands = 0 : i64, tpu.core_type = #tpu.core_type<tc>, window_params = [{transform_indices = @transform_0, window_bounds = array<i64: 104, 32>}, {pipeline_mode = #tpu.pipeline_mode<synchronous>, transform_indices = @transform_1, window_bounds = array<i64: 32, 176>}, {pipeline_mode = #tpu.pipeline_mode<synchronous>, transform_indices = @transform_2, window_bounds = array<i64: 1, 176>}, {pipeline_mode = #tpu.pipeline_mode<synchronous>, transform_indices = @transform_3, window_bounds = array<i64: 128, 48>}, {pipeline_mode = #tpu.pipeline_mode<synchronous>, transform_indices = @transform_4, window_bounds = array<i64: 1, 48>}, {pipeline_mode = #tpu.pipeline_mode<synchronous>, transform_indices = @transform_5, window_bounds = array<i64: 1, 48>}, {transform_indices = @transform_6, window_bounds = array<i64: 104, 48>}]} {
    %c0 = arith.constant 0 : index
    %c0_0 = arith.constant 0 : index
    %0 = vector.load %arg1[%c0, %c0_0] : memref<104x32xf32, #tpu.memory_space<vmem>>, vector<104x32xf32>
    %c0_1 = arith.constant 0 : index
    %c0_2 = arith.constant 0 : index
    %1 = vector.load %arg2[%c0_1, %c0_2] : memref<32x176xf32, #tpu.memory_space<vmem>>, vector<32x176xf32>
    %cst = arith.constant dense<0.000000e+00> : vector<104x176xf32>
    %2 = tpu.matmul %0, %1, %cst {dimension_numbers = #tpu.dot_dimension_numbers<[1], [0], [0], [1], [0, 0, 1, 1], [], []>} : vector<104x32xf32>, vector<32x176xf32>, vector<104x176xf32> -> vector<104x176xf32>
    %c0_3 = arith.constant 0 : index
    %c0_4 = arith.constant 0 : index
    %3 = vector.load %arg3[%c0_3, %c0_4] : memref<1x176xf32, #tpu.memory_space<vmem>>, vector<1x176xf32>
    %4 = vector.broadcast %3 : vector<1x176xf32> to vector<104x176xf32>
    %5 = arith.addf %2, %4 : vector<104x176xf32>
    %6 = vector.extract_strided_slice %5 {offsets = [0, 0], sizes = [104, 128], strides = [1, 1]} : vector<104x176xf32> to vector<104x128xf32>
    %cst_5 = arith.constant 0.000000e+00 : f32
    %7 = vector.broadcast %cst_5 : f32 to vector<104x128xf32>
    %8 = arith.maximumf %6, %7 : vector<104x128xf32>
    %9 = vector.extract_strided_slice %5 {offsets = [0, 128], sizes = [104, 48], strides = [1, 1]} : vector<104x176xf32> to vector<104x48xf32>
    %c0_6 = arith.constant 0 : index
    %c0_7 = arith.constant 0 : index
    %10 = vector.load %arg4[%c0_6, %c0_7] : memref<128x48xf32, #tpu.memory_space<vmem>>, vector<128x48xf32>
    %cst_8 = arith.constant dense<0.000000e+00> : vector<104x48xf32>
    %11 = tpu.matmul %8, %10, %cst_8 {dimension_numbers = #tpu.dot_dimension_numbers<[1], [0], [0], [1], [0, 0, 1, 1], [], []>} : vector<104x128xf32>, vector<128x48xf32>, vector<104x48xf32> -> vector<104x48xf32>
    %c0_9 = arith.constant 0 : index
    %c0_10 = arith.constant 0 : index
    %12 = vector.load %arg5[%c0_9, %c0_10] : memref<1x48xf32, #tpu.memory_space<vmem>>, vector<1x48xf32>
    %13 = vector.broadcast %12 : vector<1x48xf32> to vector<104x48xf32>
    %14 = arith.addf %11, %13 : vector<104x48xf32>
    %15 = arith.addf %14, %9 : vector<104x48xf32>
    %16 = arith.mulf %15, %15 : vector<104x48xf32>
    %cst_11 = arith.constant dense<0.000000e+00> : vector<104xf32>
    %17 = vector.multi_reduction <add>, %16, %cst_11 [1] : vector<104x48xf32> to vector<104xf32>
    %18 = vector.shape_cast %17 : vector<104xf32> to vector<104x1xf32>
    %cst_12 = arith.constant 4.800000e+01 : f32
    %19 = vector.broadcast %cst_12 : f32 to vector<104x1xf32>
    %20 = arith.divf %18, %19 : vector<104x1xf32>
    %cst_13 = arith.constant 9.99999997E-7 : f32
    %21 = vector.broadcast %cst_13 : f32 to vector<104x1xf32>
    %22 = arith.addf %20, %21 : vector<104x1xf32>
    %23 = math.rsqrt %22 : vector<104x1xf32>
    %24 = vector.broadcast %23 : vector<104x1xf32> to vector<104x48xf32>
    %25 = arith.mulf %15, %24 : vector<104x48xf32>
    %c0_14 = arith.constant 0 : index
    %c0_15 = arith.constant 0 : index
    %26 = vector.load %arg6[%c0_14, %c0_15] : memref<1x48xf32, #tpu.memory_space<vmem>>, vector<1x48xf32>
    %27 = vector.broadcast %26 : vector<1x48xf32> to vector<104x48xf32>
    %28 = arith.mulf %27, %25 : vector<104x48xf32>
    %c0_16 = arith.constant 0 : index
    %c0_17 = arith.constant 0 : index
    %29 = vector.load %arg7[%c0_16, %c0_17] : memref<104x48xf32, #tpu.memory_space<vmem>>, vector<104x48xf32>
    tpu.vector_store %arg7[%c0_16, %c0_17], %28 {strides = array<i32>} : memref<104x48xf32, #tpu.memory_space<vmem>>, vector<104x48xf32>,
    return
  }
  func.func @transform_0(%arg0: i32) -> (i32, i32) {
    %c0_i32 = arith.constant 0 : i32
    %c0_i32_0 = arith.constant 0 : i32
    return %arg0, %c0_i32 : i32, i32
  }
  func.func @transform_1(%arg0: i32) -> (i32, i32) {
    %c0_i32 = arith.constant 0 : i32
    %c0_i32_0 = arith.constant 0 : i32
    %c0_i32_1 = arith.constant 0 : i32
    return %c0_i32, %c0_i32_0 : i32, i32
  }
  func.func @transform_2(%arg0: i32) -> (i32, i32) {
    %c0_i32 = arith.constant 0 : i32
    %c0_i32_0 = arith.constant 0 : i32
    %c0_i32_1 = arith.constant 0 : i32
    return %c0_i32, %c0_i32_0 : i32, i32
  }
  func.func @transform_3(%arg0: i32) -> (i32, i32) {
    %c0_i32 = arith.constant 0 : i32
    %c0_i32_0 = arith.constant 0 : i32
    %c0_i32_1 = arith.constant 0 : i32
    return %c0_i32, %c0_i32_0 : i32, i32
  }
  func.func @transform_4(%arg0: i32) -> (i32, i32) {
    %c0_i32 = arith.constant 0 : i32
    %c0_i32_0 = arith.constant 0 : i32
    %c0_i32_1 = arith.constant 0 : i32
    return %c0_i32, %c0_i32_0 : i32, i32
  }
  func.func @transform_5(%arg0: i32) -> (i32, i32) {
    %c0_i32 = arith.constant 0 : i32
    %c0_i32_0 = arith.constant 0 : i32
    %c0_i32_1 = arith.constant 0 : i32
    return %c0_i32, %c0_i32_0 : i32, i32
  }
  func.func @transform_6(%arg0: i32) -> (i32, i32) {
    %c0_i32 = arith.constant 0 : i32
    %c0_i32_0 = arith.constant 0 : i32
    return %arg0, %c0_i32 : i32, i32
  }
}

</mosaic_0001>

<bundles_post_ra>
// kernel: tpu_custom_call.1
= control target key start
LH: loop header
LB: loop body
LE: loop exit
PB: predicated region body
PF: predicated region fallthrough
CT: control target
= control target key end

     0   :  { %s1502_s21 = smov 0   ;;  %s1504_s22 = smov 0   ;;  %s2006_s0 = inlined_call_operand.vmem [shape: f32[200,32], index: 0, kind: input, shape index: {}]   ;;  %s2007_s1 = inlined_call_operand.vmem [shape: f32[32,176], index: 1, kind: input, shape index: {}]   ;;  %s2008_s2 = inlined_call_operand.vmem [shape: f32[1,176], index: 2, kind: input, shape index: {}]   ;;  %s2009_s3 = inlined_call_operand.vmem [shape: f32[128,48], index: 3, kind: input, shape index: {}]   ;;  %s2010_s4 = inlined_call_operand.vmem [shape: f32[1,48], index: 4, kind: input, shape index: {}]   ;;  %s2011_s5 = inlined_call_operand.vmem [shape: f32[1,48], index: 5, kind: input, shape index: {}]   ;;  %s2012_s6 = inlined_call_operand.vmem [shape: f32[200,48], index: 6, kind: output, shape index: {}]  }
   0x1   :  { %s1506_s23 = smov 0  }
   0x2 LB: > { %s1515_s24 = sadd.s32 4294967295, %s1430_s23   ;;  %s1517_s25 = sadd.s32 1, %s1430_s23   ;;  %s1430_s23 = sphi %s1506_s23, %s2019_s23   ;;  %s1426_s22 = sphi %s1504_s22, %s2018_s22   ;;  %s1422_s21 = sphi %s1502_s21, %s2017_s21  }
   0x3   : > { %s151_s26 = ssub.s32 %s1430_s23, %s1517_s25  ;;  %s154_s27 = sadd.s32 1, %s1426_s22 }
   0x4   : > { %p152_p0 = scmp.eq.s32.totalorder %s151_s26, 0  ;;  %p164_p1 = scmp.ne.s32.totalorder %s1426_s22, %s1422_s21 }
   0x5   : > { %p165_p2 = scmp.eq.s32.totalorder %s1515_s24, 1  ;;  %p1075_p3 = scmp.ge.s32.totalorder %s1430_s23, 1 }
   0x6   : > { %s1525_s28 = scalar_select %p152_p0, %s1426_s22, %s154_s27  }
   0x7   : > { %p1527_p4 = por %p165_p2, %p164_p1  ;;  %p221_p5 = scmp.lt.s32.totalorder %s1430_s23, 3 }
   0x9   : > { %p222_p6 = pnand %p1075_p3, %p221_p5 }
   0xa   : > { %v287_v0 = vld [vmem:[%s2007_s1 + $0x8] sm:$0xff] (!%p222_p6)  ;;  %v289_v1 = vld [vmem:[%s2007_s1 + $0x18] sm:$0xff] (!%p222_p6)  ;;  %v286_v2 = vld [vmem:[%s2007_s1] sm:$0xff] (!%p222_p6)  ;;  %s1541_s12 = smul.u32 (!%p222_p6), 13, %s1515_s24  ;;  %v1464_v7 = vmov (!%p222_p6), 0.0   ;;  %v1465_v13 = vmov (!%p222_p6), 0.0|0.0   ;;  %v296_v51 = vlaneseq (!%p222_p6) }
   0xb   : > { %225 = sbr.rel (%p222_p6) target bundleno = 729 (0x2d9), region = 44  ;;  %v1205_v3 = vpack.c.bf16 (!%p222_p6), %v289_v1, %v287_v0  ;;  %v288_v4 = vld [vmem:[%s2007_s1 + $0x10] sm:$0xff] (!%p222_p6)  ;;  %v291_v5 = vld [vmem:[%s2007_s1 + $0x28] sm:$0xff] (!%p222_p6)  ;;  %v293_v6 = vld [vmem:[%s2007_s1 + $0x38] sm:$0xff] (!%p222_p6)  ;;  %410 = vmatprep.mubr.f32.mxu0 (!%p222_p6), %v1464_v7  ;;  %1237 = vmatprep.subr.bf16.mxu1 (!%p222_p6), %v1465_v13  ;;  %vm306_vm0 = vcmask (!%p222_p6), 261120   ;;  %vm1466_vm1 = vmmov (!%p222_p6), 0  }
   0xc   : > { %v1207_v8 = vpack.c.bf16 (!%p222_p6), %v288_v4, %v286_v2  ;;  %v1209_v9 = vpack.c.bf16 (!%p222_p6), %v293_v6, %v291_v5  ;;  %v290_v10 = vld [vmem:[%s2007_s1 + $0x20] sm:$0xff] (!%p222_p6)  ;;  %v292_v11 = vld [vmem:[%s2007_s1 + $0x30] sm:$0xff] (!%p222_p6)  ;;  %p259_p7 = scmp.lt.s32.totalorder (!%p222_p6), %s1541_s12, 24  ;;  %v503_v14 = vld [vmem:[%s2009_s3 + $0x8] sm:$0xff] (!%p222_p6)  ;;  %1175 = vmatprep.mubr.msk.f32.mxu1 (!%p222_p6), %vm1466_vm1, %v1464_v7  ;;  %v1672_v52 = vshrl.u32 (!%p222_p6), %v296_v51, 7  ;;  %vm681_vm2 = vcmask (!%p222_p6), 392192  }
   0xd   : > { %v502_v12 = vld [vmem:[%s2009_s3] sm:$0xff] (!%p222_p6)  ;;  %1206 = vmatprep.subr.bf16.mxu0 (!%p222_p6), %v1205_v3  ;;  %v1211_v15 = vpack.c.bf16 (!%p222_p6), %v292_v11, %v290_v10  ;;  %v504_v17 = vld [vmem:[%s2009_s3 + $0x10] sm:$0xff] (!%p222_p6)  ;;  %v505_v18 = vld [vmem:[%s2009_s3 + $0x18] sm:$0xff] (!%p222_p6)  ;;  %s251_s13 = sand.u32 (!%p222_p6), 1, %s1422_s21  }
   0xe   : > { %1208 = vmatpush1.bf16.msra.mxu0 (!%p222_p6), %v1207_v8  ;;  %v1214_v16 = vpack.c.bf16 (!%p222_p6), %v503_v14, %v502_v12  ;;  %v1217_v20 = vpack.c.bf16 (!%p222_p6), %v505_v18, %v504_v17  ;;  %v506_v21 = vld [vmem:[%s2009_s3 + $0x20] sm:$0xff] (!%p222_p6)  ;;  %v507_v22 = vld [vmem:[%s2009_s3 + $0x28] sm:$0xff] (!%p222_p6)  ;;  %v508_v25 = vld [vmem:[%s2009_s3 + $0x30] sm:$0xff] (!%p222_p6)  ;;  %v298_v53 = vsub.s32 (!%p222_p6), 0, %v1672_v52  ;;  %s1253_s14 = smul.u32 (!%p222_p6), 104, %s251_s13 }
   0xf   : > { %1210 = vmatprep.subr.bf16.mxu0 (!%p222_p6), %v1209_v9  ;;  %v1220_v24 = vpack.c.bf16 (!%p222_p6), %v507_v22, %v506_v21  ;;  %v509_v26 = vld [vmem:[%s2009_s3 + $0x38] sm:$0xff] (!%p222_p6)  ;;  %v510_v29 = vld [vmem:[%s2009_s3 + $0x40] sm:$0xff] (!%p222_p6)  ;;  %v511_v30 = vld [vmem:[%s2009_s3 + $0x48] sm:$0xff] (!%p222_p6) }
  0x10   : > { %1245 = vmatpush3.bf16.msra.mxu1 (!%p222_p6), %v1214_v16  ;;  %v1223_v28 = vpack.c.bf16 (!%p222_p6), %v509_v26, %v508_v25  ;;  %v1226_v32 = vpack.c.bf16 (!%p222_p6), %v511_v30, %v510_v29  ;;  %v512_v33 = vld [vmem:[%s2009_s3 + $0x50] sm:$0xff] (!%p222_p6)  ;;  %v513_v34 = vld [vmem:[%s2009_s3 + $0x58] sm:$0xff] (!%p222_p6)  ;;  %v514_v37 = vld [vmem:[%s2009_s3 + $0x60] sm:$0xff] (!%p222_p6)  ;;  %s1865_s21 = scalar_lea.vmem (!%p222_p6), [#allocation2], %s1253_s14  }
  0x11   : > { %1238 = vmatprep.subr.bf16.mxu1 (!%p222_p6), %v1465_v13  ;;  %v1229_v36 = vpack.c.bf16 (!%p222_p6), %v513_v34, %v512_v33  ;;  %v515_v38 = vld [vmem:[%s2009_s3 + $0x68] sm:$0xff] (!%p222_p6)  ;;  %v516_v48 = vld [vmem:[%s2009_s3 + $0x70] sm:$0xff] (!%p222_p6)  ;;  %v517_v49 = vld [vmem:[%s2009_s3 + $0x78] sm:$0xff] (!%p222_p6) }
  0x12   : > { %s260_s9 = scalar_select %p259_p7, %s1541_s12, 24  ;;  %1212 = vmatpush1.bf16.msra.mxu0 %v1211_v15  ;;  %v1232_v40 = vpack.c.bf16 %v515_v38, %v514_v37  ;;  %v1235_v50 = vpack.c.bf16 %v517_v49, %v516_v48  ;;  %v1678_v54 = vld [vmem:[%s2008_s2] sm:$0x3] }
  0x13   : > { %1213 = vmatprep.subr.bf16.mxu0 %v1465_v13  ;;  %v1681_v55 = vrot.slane %v1678_v54, %v298_v53  ;;  %s815_s17 = ssub.s32 (%p1527_p4), 25, %s1541_s12  ;;  %s1104_s19 = smul.u32 (%p1527_p4), 104, %s1515_s24 }
  0x14   : > { %s1076_s15 = sshll.u32 %s260_s9, 3  ;;  %1246 = vmatpush3.bf16.msra.mxu1 %v1217_v20  ;;  %p816_p8 = scmp.lt.s32.totalorder (%p1527_p4), %s815_s17, 13 }
  0x15   : > { %s1577_s18 = scalar_lea.vmem %s2006_s0, %s1076_s15  ;;  %1239 = vmatprep.subr.bf16.mxu1 %v1465_v13  ;;  %s1924_s26 = scalar_lea.vmem (%p1527_p4), %s2012_s6, %s1104_s19  }
  0x16   : > { %v273_v19 = vld [vmem:[%s1577_s18] sm:$0xff]  ;;  %v274_v23 = vld [vmem:[%s1577_s18 + $0x8] sm:$0xff]  ;;  %v275_v27 = vld [vmem:[%s1577_s18 + $0x10] sm:$0xff] }
  0x17   : > { %1077 = vmatmul.mubr.msk.f32.vlgmr.msra.gmra.mrb[0].mxu0 %vm306_vm0, %v273_v19  ;;  %v276_v31 = vld [vmem:[%s1577_s18 + $0x18] sm:$0xff]  ;;  %v277_v35 = vld [vmem:[%s1577_s18 + $0x20] sm:$0xff]  ;;  %v278_v39 = vld [vmem:[%s1577_s18 + $0x28] sm:$0xff] }
  0x18   : > { %416 = vmatprep.mubr.f32.mxu0 %v1464_v7  ;;  %1215 = vmatpush3.bf16.msra.mxu0 %v1214_v16  ;;  %v279_v41 = vld [vmem:[%s1577_s18 + $0x30] sm:$0xff]  ;;  %v280_v42 = vld [vmem:[%s1577_s18 + $0x38] sm:$0xff]  ;;  %v281_v43 = vld [vmem:[%s1577_s18 + $0x40] sm:$0xff] }
  0x19   : > { %1216 = vmatprep.subr.bf16.mxu0 %v1465_v13  ;;  %1247 = vmatpush3.bf16.msra.mxu1 %v1220_v24  ;;  %v282_v44 = vld [vmem:[%s1577_s18 + $0x48] sm:$0xff]  ;;  %v283_v45 = vld [vmem:[%s1577_s18 + $0x50] sm:$0xff]  ;;  %v284_v46 = vld [vmem:[%s1577_s18 + $0x58] sm:$0xff] }
  0x1a   : > { %1240 = vmatprep.subr.bf16.mxu1 %v1465_v13  ;;  %v285_v47 = vld [vmem:[%s1577_s18 + $0x60] sm:$0xff] }
  0x1b   : > { %1078 = vmatmul.mubr.msk.f32.gmra.mrb[2].mxu0 %vm306_vm0, %v274_v23 }
  0x1c   : > { %422 = vmatprep.mubr.f32.mxu0 %v1464_v7  ;;  %1218 = vmatpush3.bf16.msra.mxu0 %v1217_v20 }
  0x1d   : > { %1219 = vmatprep.subr.bf16.mxu0 %v1465_v13  ;;  %1248 = vmatpush3.bf16.msra.mxu1 %v1223_v28 }
  0x1e   : > { %1241 = vmatprep.subr.bf16.mxu1 %v1465_v13 }
  0x1f   : > { %1079 = vmatmul.mubr.msk.f32.gmra.mrb[4].mxu0 %vm306_vm0, %v275_v27 }
  0x20   : > { %428 = vmatprep.mubr.f32.mxu0 %v1464_v7  ;;  %1221 = vmatpush3.bf16.msra.mxu0 %v1220_v24 }
  0x21   : > { %1222 = vmatprep.subr.bf16.mxu0 %v1465_v13  ;;  %1249 = vmatpush3.bf16.msra.mxu1 %v1226_v32 }
  0x22   : > { %1242 = vmatprep.subr.bf16.mxu1 %v1465_v13 }
  0x23   : > { %1080 = vmatmul.mubr.msk.f32.gmra.mrb[6].mxu0 %vm306_vm0, %v276_v31 }
  0x24   : > { %434 = vmatprep.mubr.f32.mxu0 %v1464_v7  ;;  %1224 = vmatpush3.bf16.msra.mxu0 %v1223_v28 }
  0x25   : > { %1225 = vmatprep.subr.bf16.mxu0 %v1465_v13  ;;  %1250 = vmatpush3.bf16.msra.mxu1 %v1229_v36 }
  0x26   : > { %1243 = vmatprep.subr.bf16.mxu1 %v1465_v13 }
  0x27   : > { %1081 = vmatmul.mubr.msk.f32.gmra.mrb[8].mxu0 %vm306_vm0, %v277_v35 }
  0x28   : > { %440 = vmatprep.mubr.f32.mxu0 %v1464_v7  ;;  %1227 = vmatpush3.bf16.msra.mxu0 %v1226_v32 }
  0x29   : > { %1228 = vmatprep.subr.bf16.mxu0 %v1465_v13  ;;  %1251 = vmatpush3.bf16.msra.mxu1 %v1232_v40 }
  0x2a   : > { %1244 = vmatprep.subr.bf16.mxu1 %v1465_v13 }
  0x2b   : > { %1082 = vmatmul.mubr.msk.f32.gmra.mrb[10].mxu0 %vm306_vm0, %v278_v39 }
  0x2c   : > { %446 = vmatprep.mubr.f32.mxu0 %v1464_v7  ;;  %1230 = vmatpush3.bf16.msra.mxu0 %v1229_v36 }
  0x2d   : > { %1231 = vmatprep.subr.bf16.mxu0 %v1465_v13  ;;  %1252 = vmatpush3.bf16.msra.mxu1 %v1235_v50 }
  0x2f   : > { %1083 = vmatmul.mubr.msk.f32.gmra.mrb[12].mxu0 %vm306_vm0, %v279_v41 }
  0x30   : > { %452 = vmatprep.mubr.f32.mxu0 %v1464_v7  ;;  %1233 = vmatpush3.bf16.msra.mxu0 %v1232_v40 }
  0x31   : > { %1234 = vmatprep.subr.bf16.mxu0 %v1465_v13 }
  0x33   : > { %1084 = vmatmul.mubr.msk.f32.gmra.mrb[14].mxu0 %vm306_vm0, %v280_v42 }
  0x34   : > { %458 = vmatprep.mubr.f32.mxu0 %v1464_v7  ;;  %1236 = vmatpush3.bf16.msra.mxu0 %v1235_v50 }
  0x37   : > { %1085 = vmatmul.mubr.msk.f32.gmra.mrb[16].mxu0 %vm306_vm0, %v281_v43 }
  0x38   : > { %464 = vmatprep.mubr.f32.mxu0 %v1464_v7 }
  0x3b   : > { %1086 = vmatmul.mubr.msk.f32.gmra.mrb[18].mxu0 %vm306_vm0, %v282_v44 }
  0x3c   : > { %470 = vmatprep.mubr.f32.mxu0 %v1464_v7 }
  0x3f   : > { %1087 = vmatmul.mubr.msk.f32.gmra.mrb[20].mxu0 %vm306_vm0, %v283_v45  ;;  %v302_v45 = vsub.s32 1, %v1672_v52 }
  0x40   : > { %476 = vmatprep.mubr.f32.mxu0 %v1464_v7 }
  0x43   : > { %1088 = vmatmul.mubr.msk.f32.gmra.mrb[22].mxu0 %vm306_vm0, %v284_v46  ;;  %v1746_v46 = vrot.slane %v1678_v54, %v302_v45 }
  0x44   : > { %482 = vmatprep.mubr.f32.mxu0 %v1464_v7 }
  0x47   : > { %1089 = vmatmul.mubr.msk.f32.gmra.mrb[24].mxu0 %vm306_vm0, %v285_v47  ;;  %v1751_v47 = vld [vmem:[%s2010_s4] ss:$0 sm:$0xff] }
  0x48   : > { %1166 = vmatprep.mubr.msk.f32.mxu0 %vm1466_vm1, %v1464_v7 }
  0xea   : > { %v412_v56 = vpop.f32.mrb[0].mxu0 }
  0xeb   : > { %v413_v57 = vadd.f32 %v412_v56, %v1681_v55  ;;  %v1684_v58 = vpop.f32.mrb[1].mxu0 }
  0xec   : > { %v415_v49 = vadd.f32 %v1684_v58, %v1746_v46 }
  0xed   : > { %v489_v59 = vmax.f32 %v413_v57, 0.0 }
  0xee   : > { %v418_v60 = vpop.f32.mrb[2].mxu0 }
  0xef   : > { %v419_v61 = vadd.f32 %v418_v60, %v1681_v55  ;;  %v1687_v62 = vpop.f32.mrb[3].mxu0  ;;  %1167 = vmatmul.mubr.f32.vlgmr.msra.gmra.mrb[26].mxu0 %v489_v59 }
  0xf0   : > { %1169 = vmatprep.mubr.msk.f32.mxu0 %vm1466_vm1, %v1464_v7  ;;  %v421_v52 = vadd.f32 %v1687_v62, %v1746_v46 }
  0xf1   : > { %v490_v63 = vmax.f32 %v419_v61, 0.0 }
  0xf2   : > { %v424_v0 = vpop.f32.mrb[4].mxu0 }
  0xf3   : > { %v425_v1 = vadd.f32 %v424_v0, %v1681_v55  ;;  %v1692_v2 = vpop.f32.mrb[5].mxu0  ;;  %1170 = vmatmul.mubr.f32.gmra.mrb[28].mxu0 %v490_v63 }
  0xf4   : > { %1172 = vmatprep.mubr.msk.f32.mxu0 %vm1466_vm1, %v1464_v7  ;;  %v427_v60 = vadd.f32 %v1692_v2, %v1746_v46 }
  0xf5   : > { %v491_v3 = vmax.f32 %v425_v1, 0.0 }
  0xf6   : > { %v430_v4 = vpop.f32.mrb[6].mxu0 }
  0xf7   : > { %v431_v5 = vadd.f32 %v430_v4, %v1681_v55  ;;  %v1697_v6 = vpop.f32.mrb[7].mxu0  ;;  %1173 = vmatmul.mubr.f32.gmra.mrb[30].mxu0 %v491_v3 }
  0xf8   : > { %v433_v4 = vadd.f32 %v1697_v6, %v1746_v46 }
  0xf9   : > { %v492_v8 = vmax.f32 %v431_v5, 0.0 }
  0xfa   : > { %v436_v9 = vpop.f32.mrb[8].mxu0 }
  0xfb   : > { %v437_v10 = vadd.f32 %v436_v9, %v1681_v55  ;;  %v1700_v11 = vpop.f32.mrb[9].mxu0  ;;  %1176 = vmatmul.mubr.f32.vlgmr.msra.gmra.mrb[0].mxu1 %v492_v8 }
  0xfc   : > { %1178 = vmatprep.mubr.msk.f32.mxu1 %vm1466_vm1, %v1464_v7 }
  0xfd   : > { %v493_v12 = vmax.f32 %v437_v10, 0.0 }
  0xfe   : > { %v442_v13 = vpop.f32.mrb[10].mxu0 }
  0xff   : > { %v443_v14 = vadd.f32 %v442_v13, %v1681_v55  ;;  %v1705_v15 = vpop.f32.mrb[11].mxu0  ;;  %1179 = vmatmul.mubr.f32.gmra.mrb[2].mxu1 %v493_v12  ;;  %v439_v13 = vadd.f32 %v1700_v11, %v1746_v46 }
 0x100   : > { %1181 = vmatprep.mubr.msk.f32.mxu1 %vm1466_vm1, %v1464_v7 }
 0x101   : > { %v494_v16 = vmax.f32 %v443_v14, 0.0 }
 0x102   : > { %v448_v17 = vpop.f32.mrb[12].mxu0 }
 0x103   : > { %v449_v18 = vadd.f32 %v448_v17, %v1681_v55  ;;  %v1710_v19 = vpop.f32.mrb[13].mxu0  ;;  %1182 = vmatmul.mubr.f32.gmra.mrb[4].mxu1 %v494_v16 }
 0x104   : > { %1184 = vmatprep.mubr.msk.f32.mxu1 %vm1466_vm1, %v1464_v7 }
 0x105   : > { %v495_v20 = vmax.f32 %v449_v18, 0.0 }
 0x106   : > { %v454_v21 = vpop.f32.mrb[14].mxu0 }
 0x107   : > { %v455_v22 = vadd.f32 %v454_v21, %v1681_v55  ;;  %v1715_v23 = vpop.f32.mrb[15].mxu0  ;;  %1185 = vmatmul.mubr.f32.gmra.mrb[6].mxu1 %v495_v20  ;;  %v445_v21 = vadd.f32 %v1705_v15, %v1746_v46 }
 0x108   : > { %1187 = vmatprep.mubr.msk.f32.mxu1 %vm1466_vm1, %v1464_v7 }
 0x109   : > { %v496_v24 = vmax.f32 %v455_v22, 0.0 }
 0x10a   : > { %v460_v25 = vpop.f32.mrb[16].mxu0 }
 0x10b   : > { %v461_v26 = vadd.f32 %v460_v25, %v1681_v55  ;;  %v1720_v27 = vpop.f32.mrb[17].mxu0  ;;  %1188 = vmatmul.mubr.f32.gmra.mrb[8].mxu1 %v496_v24 }
 0x10c   : > { %1190 = vmatprep.mubr.msk.f32.mxu1 %vm1466_vm1, %v1464_v7  ;;  %v463_v45 = vadd.f32 %v1720_v27, %v1746_v46 }
 0x10d   : > { %v497_v28 = vmax.f32 %v461_v26, 0.0 }
 0x10e   : > { %v466_v29 = vpop.f32.mrb[18].mxu0 }
 0x10f   : > { %v467_v30 = vadd.f32 %v466_v29, %v1681_v55  ;;  %v1725_v31 = vpop.f32.mrb[19].mxu0  ;;  %1191 = vmatmul.mubr.f32.gmra.mrb[10].mxu1 %v497_v28  ;;  %v451_v29 = vadd.f32 %v1710_v19, %v1746_v46 }
 0x110   : > { %1193 = vmatprep.mubr.msk.f32.mxu1 %vm1466_vm1, %v1464_v7 }
 0x111   : > { %v498_v32 = vmax.f32 %v467_v30, 0.0 }
 0x112   : > { %v472_v33 = vpop.f32.mrb[20].mxu0 }
 0x113   : > { %v473_v34 = vadd.f32 %v472_v33, %v1681_v55  ;;  %v1730_v35 = vpop.f32.mrb[21].mxu0  ;;  %1194 = vmatmul.mubr.f32.gmra.mrb[12].mxu1 %v498_v32 }
 0x114   : > { %1196 = vmatprep.mubr.msk.f32.mxu1 %vm1466_vm1, %v1464_v7 }
 0x115   : > { %v499_v36 = vmax.f32 %v473_v34, 0.0 }
 0x116   : > { %v478_v37 = vpop.f32.mrb[22].mxu0 }
 0x117   : > { %v479_v38 = vadd.f32 %v478_v37, %v1681_v55  ;;  %v1735_v39 = vpop.f32.mrb[23].mxu0  ;;  %1197 = vmatmul.mubr.f32.gmra.mrb[14].mxu1 %v499_v36  ;;  %v457_v37 = vadd.f32 %v1715_v23, %v1746_v46 }
 0x118   : > { %1199 = vmatprep.mubr.msk.f32.mxu1 %vm1466_vm1, %v1464_v7 }
 0x119   : > { %v500_v40 = vmax.f32 %v479_v38, 0.0 }
 0x11a   : > { %v484_v41 = vpop.f32.mrb[24].mxu0 }
 0x11b   : > { %v485_v42 = vadd.f32 %v484_v41, %v1681_v55  ;;  %v1740_v43 = vpop.f32.mrb[25].mxu0  ;;  %1200 = vmatmul.mubr.f32.gmra.mrb[16].mxu1 %v500_v40 }
 0x11c   : > { %1202 = vmatprep.mubr.msk.f32.mxu1 %vm1466_vm1, %v1464_v7 }
 0x11d   : > { %v501_v44 = vmax.f32 %v485_v42, 0.0 }
 0x11f   : > { %1203 = vmatmul.mubr.f32.gmra.mrb[18].mxu1 %v501_v44 }
 0x1c2   : > { %v591_v48 = vpop.f32.mrb[26].mxu0 }
 0x1c3   : > { %v592_v50 = vadd.f32 %v1751_v47, %v591_v48  ;;  %v1168_v51 = vpop.f32.mrb[27].mxu0 }
 0x1c5   : > { %v1756_v7 = vadd.f32 %v592_v50, %v415_v49 }
 0x1c6   : > { %v596_v53 = vpop.f32.mrb[28].mxu0 }
 0x1c7   : > { %v597_v54 = vadd.f32 %v1751_v47, %v596_v53  ;;  %v1171_v55 = vpop.f32.mrb[29].mxu0  ;;  %v668_v56 = vmul.f32 %v1756_v7, %v1756_v7 }
 0x1c9   : > { %v1763_v57 = vadd.f32 %v597_v54, %v421_v52  ;;  %v682_v58 = vsel %vm681_vm2, %v668_v56, 0.0  ;;  %v469_v52 = vadd.f32 %v1725_v31, %v1746_v46 }
 0x1ca   : > { %683 = vadd.xlane.f32.xlu0 %v682_v58  ;;  %v601_v59 = vpop.f32.mrb[30].mxu0 }
 0x1cb   : > { %v602_v61 = vadd.f32 %v1751_v47, %v601_v59  ;;  %v1174_v63 = vpop.f32.mrb[31].mxu0  ;;  %v669_v62 = vmul.f32 %v1763_v57, %v1763_v57 }
 0x1cd   : > { %v1771_v0 = vadd.f32 %v602_v61, %v427_v60  ;;  %v685_v1 = vsel %vm681_vm2, %v669_v62, 0.0  ;;  %v475_v60 = vadd.f32 %v1730_v35, %v1746_v46 }
 0x1ce   : > { %v606_v3 = vpop.f32.mrb[0].mxu1  ;;  %686 = vadd.xlane.f32.xlu0 %v685_v1 }
 0x1cf   : > { %v607_v5 = vadd.f32 %v1751_v47, %v606_v3  ;;  %v1177_v8 = vpop.f32.mrb[1].mxu1  ;;  %v670_v2 = vmul.f32 %v1771_v0, %v1771_v0 }
 0x1d1   : > { %v1779_v9 = vadd.f32 %v607_v5, %v433_v4  ;;  %v688_v10 = vsel %vm681_vm2, %v670_v2, 0.0  ;;  %v481_v4 = vadd.f32 %v1735_v39, %v1746_v46 }
 0x1d2   : > { %v611_v12 = vpop.f32.mrb[2].mxu1  ;;  %689 = vadd.xlane.f32.xlu1 %v688_v10 }
 0x1d3   : > { %v612_v14 = vadd.f32 %v1751_v47, %v611_v12  ;;  %v1180_v16 = vpop.f32.mrb[3].mxu1  ;;  %v671_v6 = vmul.f32 %v1779_v9, %v1779_v9 }
 0x1d5   : > { %v1787_v17 = vadd.f32 %v612_v14, %v439_v13  ;;  %v691_v18 = vsel %vm681_vm2, %v671_v6, 0.0  ;;  %v487_v13 = vadd.f32 %v1740_v43, %v1746_v46 }
 0x1d6   : > { %v616_v20 = vpop.f32.mrb[4].mxu1  ;;  %692 = vadd.xlane.f32.xlu1 %v691_v18 }
 0x1d7   : > { %v617_v22 = vadd.f32 %v1751_v47, %v616_v20  ;;  %v1183_v24 = vpop.f32.mrb[5].mxu1  ;;  %v672_v11 = vmul.f32 %v1787_v17, %v1787_v17 }
 0x1d9   : > { %v1795_v25 = vadd.f32 %v617_v22, %v445_v21  ;;  %v694_v26 = vsel %vm681_vm2, %v672_v11, 0.0 }
 0x1da   : > { %v621_v28 = vpop.f32.mrb[6].mxu1  ;;  %695 = vadd.xlane.f32.xlu0 %v694_v26 }
 0x1db   : > { %v622_v30 = vadd.f32 %v1751_v47, %v621_v28  ;;  %v1186_v32 = vpop.f32.mrb[7].mxu1  ;;  %v673_v15 = vmul.f32 %v1795_v25, %v1795_v25 }
 0x1dd   : > { %v1803_v33 = vadd.f32 %v622_v30, %v451_v29  ;;  %v697_v34 = vsel %vm681_vm2, %v673_v15, 0.0 }
 0x1de   : > { %v626_v36 = vpop.f32.mrb[8].mxu1  ;;  %698 = vadd.xlane.f32.xlu1 %v697_v34  ;;  %v1861_v34 = vld [vmem:[%s2011_s5] ss:$0 sm:$0xff] }
 0x1df   : > { %v627_v38 = vadd.f32 %v1751_v47, %v626_v36  ;;  %v1189_v40 = vpop.f32.mrb[9].mxu1  ;;  %v674_v19 = vmul.f32 %v1803_v33, %v1803_v33 }
 0x1e1   : > { %v1811_v41 = vadd.f32 %v627_v38, %v457_v37  ;;  %v700_v42 = vsel %vm681_vm2, %v674_v19, 0.0 }
 0x1e2   : > { %v631_v44 = vpop.f32.mrb[10].mxu1  ;;  %701 = vadd.xlane.f32.xlu0 %v700_v42 }
 0x1e3   : > { %v632_v48 = vadd.f32 %v1751_v47, %v631_v44  ;;  %v1192_v49 = vpop.f32.mrb[11].mxu1  ;;  %v675_v23 = vmul.f32 %v1811_v41, %v1811_v41 }
 0x1e5   : > { %v1819_v50 = vadd.f32 %v632_v48, %v463_v45  ;;  %v703_v51 = vsel %vm681_vm2, %v675_v23, 0.0 }
 0x1e6   : > { %v636_v53 = vpop.f32.mrb[12].mxu1  ;;  %704 = vadd.xlane.f32.xlu1 %v703_v51 }
 0x1e7   : > { %v637_v54 = vadd.f32 %v1751_v47, %v636_v53  ;;  %v1195_v55 = vpop.f32.mrb[13].mxu1  ;;  %v676_v27 = vmul.f32 %v1819_v50, %v1819_v50 }
 0x1e9   : > { %v1827_v56 = vadd.f32 %v637_v54, %v469_v52  ;;  %v706_v58 = vsel %vm681_vm2, %v676_v27, 0.0 }
 0x1ea   : > { %v641_v59 = vpop.f32.mrb[14].mxu1  ;;  %707 = vadd.xlane.f32.xlu0 %v706_v58 }
 0x1eb   : > { %v642_v61 = vadd.f32 %v1751_v47, %v641_v59  ;;  %v1198_v63 = vpop.f32.mrb[15].mxu1  ;;  %v677_v31 = vmul.f32 %v1827_v56, %v1827_v56 }
 0x1ed   : > { %v1835_v62 = vadd.f32 %v642_v61, %v475_v60  ;;  %v709_v1 = vsel %vm681_vm2, %v677_v31, 0.0 }
 0x1ee   : > { %v646_v3 = vpop.f32.mrb[16].mxu1  ;;  %710 = vadd.xlane.f32.xlu1 %v709_v1 }
 0x1ef   : > { %v647_v5 = vadd.f32 %v1751_v47, %v646_v3  ;;  %v1201_v8 = vpop.f32.mrb[17].mxu1  ;;  %v678_v35 = vmul.f32 %v1835_v62, %v1835_v62 }
 0x1f1   : > { %v1843_v2 = vadd.f32 %v647_v5, %v481_v4  ;;  %v712_v10 = vsel %vm681_vm2, %v678_v35, 0.0 }
 0x1f2   : > { %v651_v12 = vpop.f32.mrb[18].mxu1  ;;  %713 = vadd.xlane.f32.xlu0 %v712_v10 }
 0x1f3   : > { %v652_v14 = vadd.f32 %v1751_v47, %v651_v12  ;;  %v1204_v16 = vpop.f32.mrb[19].mxu1  ;;  %v679_v39 = vmul.f32 %v1843_v2, %v1843_v2 }
 0x1f5   : > { %v1851_v6 = vadd.f32 %v652_v14, %v487_v13  ;;  %v715_v18 = vsel %vm681_vm2, %v679_v39, 0.0 }
 0x1f6   : > { %716 = vadd.xlane.f32.xlu1 %v715_v18 }
 0x1f7   : > { %v680_v20 = vmul.f32 %v1851_v6, %v1851_v6 }
 0x1f9   : > { %v718_v21 = vsel %vm681_vm2, %v680_v20, 0.0 }
 0x1fa   : > { %719 = vadd.xlane.f32.xlu0 %v718_v21 }
 0x257   : > { %v684_v22 = vpop.xlane.xlu0 %683 }
 0x258   : > { %v722_v43 = vmul.f32 0.020833334, %v684_v22 }
 0x25a   : > { %v735_v46 = vadd.f32 1e-06, %v722_v43 }
 0x25b   : > { %v687_v47 = vpop.xlane.xlu0 %686 }
 0x25c   : > { %1346 = vrsqrt.f32 %v735_v46  ;;  %v723_v24 = vmul.f32 0.020833334, %v687_v47 }
 0x25e   : > { %v736_v11 = vadd.f32 1e-06, %v723_v24 }
 0x25f   : > { %v690_v26 = vpop.xlane.xlu1 %689 }
 0x260   : > { %1348 = vrsqrt.f32 %v736_v11  ;;  %v724_v28 = vmul.f32 0.020833334, %v690_v26 }
 0x262   : > { %v737_v29 = vadd.f32 1e-06, %v724_v28 }
 0x263   : > { %v693_v30 = vpop.xlane.xlu1 %692 }
 0x264   : > { %1350 = vrsqrt.f32 %v737_v29  ;;  %v725_v32 = vmul.f32 0.020833334, %v693_v30 }
 0x266   : > { %v1347_v15 = vpop.eup %1346  ;;  %v738_v36 = vadd.f32 1e-06, %v725_v32 }
 0x267   : > { %v761_v37 = vmul.f32 %v1347_v15, %v1756_v7  ;;  %v696_v38 = vpop.xlane.xlu0 %695 }
 0x268   : > { %1352 = vrsqrt.f32 %v738_v36  ;;  %v726_v40 = vmul.f32 0.020833334, %v696_v38 }
 0x269   : > { %v781_v19 = vmul.f32 %v1861_v34, %v761_v37 }
 0x26a   : > { %v1349_v42 = vpop.eup %1348  ;;  %v739_v44 = vadd.f32 1e-06, %v726_v40 }
 0x26b   : > { %794 = vst.msk [vmem:[%s1865_s21] sm:$0xff] %vm681_vm2, %v781_v19  ;;  %v762_v45 = vmul.f32 %v1349_v42, %v1763_v57  ;;  %v699_v48 = vpop.xlane.xlu1 %698 }
 0x26c   : > { %1354 = vrsqrt.f32 %v739_v44  ;;  %v727_v49 = vmul.f32 0.020833334, %v699_v48 }
 0x26d   : > { %v782_v7 = vmul.f32 %v1861_v34, %v762_v45 }
 0x26e   : > { %v1351_v23 = vpop.eup %1350  ;;  %v740_v51 = vadd.f32 1e-06, %v727_v49 }
 0x26f   : > { %795 = vst.msk [vmem:[%s1865_s21 + $0x8] sm:$0xff] %vm681_vm2, %v782_v7  ;;  %v763_v53 = vmul.f32 %v1351_v23, %v1771_v0  ;;  %v702_v52 = vpop.xlane.xlu0 %701 }
 0x270   : > { %1356 = vrsqrt.f32 %v740_v51  ;;  %v728_v54 = vmul.f32 0.020833334, %v702_v52 }
 0x271   : > { %v783_v55 = vmul.f32 %v1861_v34, %v763_v53 }
 0x272   : > { %v1353_v27 = vpop.eup %1352  ;;  %v741_v58 = vadd.f32 1e-06, %v728_v54 }
 0x273   : > { %796 = vst.msk [vmem:[%s1865_s21 + $0x10] sm:$0xff] %vm681_vm2, %v783_v55  ;;  %v764_v57 = vmul.f32 %v1353_v27, %v1779_v9  ;;  %v705_v59 = vpop.xlane.xlu1 %704 }
 0x274   : > { %1358 = vrsqrt.f32 %v741_v58  ;;  %v729_v60 = vmul.f32 0.020833334, %v705_v59 }
 0x275   : > { %v784_v61 = vmul.f32 %v1861_v34, %v764_v57 }
 0x276   : > { %v1355_v63 = vpop.eup %1354  ;;  %v742_v31 = vadd.f32 1e-06, %v729_v60 }
 0x277   : > { %797 = vst.msk [vmem:[%s1865_s21 + $0x18] sm:$0xff] %vm681_vm2, %v784_v61  ;;  %v765_v0 = vmul.f32 %v1355_v63, %v1787_v17  ;;  %v708_v1 = vpop.xlane.xlu0 %707 }
 0x278   : > { %1360 = vrsqrt.f32 %v742_v31  ;;  %v730_v3 = vmul.f32 0.020833334, %v708_v1 }
 0x279   : > { %v785_v4 = vmul.f32 %v1861_v34, %v765_v0 }
 0x27a   : > { %v1357_v5 = vpop.eup %1356  ;;  %v743_v8 = vadd.f32 1e-06, %v730_v3 }
 0x27b   : > { %798 = vst.msk [vmem:[%s1865_s21 + $0x20] sm:$0xff] %vm681_vm2, %v785_v4  ;;  %v766_v9 = vmul.f32 %v1357_v5, %v1795_v25  ;;  %v711_v35 = vpop.xlane.xlu1 %710 }
 0x27c   : > { %1362 = vrsqrt.f32 %v743_v8  ;;  %v731_v10 = vmul.f32 0.020833334, %v711_v35 }
 0x27d   : > { %v786_v12 = vmul.f32 %v1861_v34, %v766_v9 }
 0x27e   : > { %v1359_v13 = vpop.eup %1358  ;;  %v744_v14 = vadd.f32 1e-06, %v731_v10 }
 0x27f   : > { %799 = vst.msk [vmem:[%s1865_s21 + $0x28] sm:$0xff] %vm681_vm2, %v786_v12  ;;  %v767_v17 = vmul.f32 %v1359_v13, %v1803_v33  ;;  %v714_v16 = vpop.xlane.xlu0 %713 }
 0x280   : > { %1364 = vrsqrt.f32 %v744_v14  ;;  %v732_v39 = vmul.f32 0.020833334, %v714_v16 }
 0x281   : > { %v787_v18 = vmul.f32 %v1861_v34, %v767_v17 }
 0x282   : > { %v1361_v20 = vpop.eup %1360  ;;  %v745_v21 = vadd.f32 1e-06, %v732_v39 }
 0x283   : > { %800 = vst.msk [vmem:[%s1865_s21 + $0x30] sm:$0xff] %vm681_vm2, %v787_v18  ;;  %v768_v25 = vmul.f32 %v1361_v20, %v1811_v41  ;;  %v717_v22 = vpop.xlane.xlu1 %716 }
 0x284   : > { %1366 = vrsqrt.f32 %v745_v21  ;;  %v733_v43 = vmul.f32 0.020833334, %v717_v22 }
 0x285   : > { %v788_v46 = vmul.f32 %v1861_v34, %v768_v25 }
 0x286   : > { %v1363_v47 = vpop.eup %1362  ;;  %v746_v33 = vadd.f32 1e-06, %v733_v43 }
 0x287   : > { %801 = vst.msk [vmem:[%s1865_s21 + $0x38] sm:$0xff] %vm681_vm2, %v788_v46  ;;  %v769_v24 = vmul.f32 %v1363_v47, %v1819_v50  ;;  %v720_v11 = vpop.xlane.xlu0 %719 }
 0x288   : > { %1368 = vrsqrt.f32 %v746_v33  ;;  %v734_v26 = vmul.f32 0.020833334, %v720_v11 }
 0x289   : > { %v789_v28 = vmul.f32 %v1861_v34, %v769_v24 }
 0x28a   : > { %v1365_v41 = vpop.eup %1364  ;;  %v747_v29 = vadd.f32 1e-06, %v734_v26 }
 0x28b   : > { %802 = vst.msk [vmem:[%s1865_s21 + $0x40] sm:$0xff] %vm681_vm2, %v789_v28  ;;  %v770_v30 = vmul.f32 %v1365_v41, %v1827_v56 }
 0x28c   : > { %1370 = vrsqrt.f32 %v747_v29 }
 0x28d   : > { %v790_v32 = vmul.f32 %v1861_v34, %v770_v30 }
 0x28e   : > { %v1367_v15 = vpop.eup %1366 }
 0x28f   : > { %803 = vst.msk [vmem:[%s1865_s21 + $0x48] sm:$0xff] %vm681_vm2, %v790_v32  ;;  %v771_v50 = vmul.f32 %v1367_v15, %v1835_v62 }
 0x291   : > { %v791_v36 = vmul.f32 %v1861_v34, %v771_v50 }
 0x292   : > { %v1369_v37 = vpop.eup %1368 }
 0x293   : > { %804 = vst.msk [vmem:[%s1865_s21 + $0x50] sm:$0xff] %vm681_vm2, %v791_v36  ;;  %v772_v38 = vmul.f32 %v1369_v37, %v1843_v2 }
 0x295   : > { %v792_v40 = vmul.f32 %v1861_v34, %v772_v38  ;;  %813 = sbr.rel (!%p1527_p4) target bundleno = 729 (0x2d9), region = 48 }
 0x296   : > { %v1371_v19 = vpop.eup %1370 }
 0x297   : > { %805 = vst.msk [vmem:[%s1865_s21 + $0x58] sm:$0xff] %vm681_vm2, %v792_v40  ;;  %v773_v56 = vmul.f32 %v1371_v19, %v1851_v6 }
 0x299   : > { %v793_v42 = vmul.f32 %v1861_v34, %v773_v56 }
 0x29b   : > { %806 = vst.msk [vmem:[%s1865_s21 + $0x60] sm:$0xff] %vm681_vm2, %v793_v42 }
 0x29c   : > { %s2021_s17 = smov (!%p816_p8, %s815_s17), 13 }
 0x29d   : > { %s1092_s27 = sshll.u32 %s2021_s17, 7 }
 0x29e   : > { %p1095_p9 = scmp.eq.s32.totalorder %s1092_s27, 0 }
 0x29f   : > { %1372 = sdivrem.u32 (!%p1095_p9), %s2021_s17, 13 }
 0x2a0   : > { %824 = sbr.rel (%p1095_p9) target bundleno = 729 (0x2d9), region = 52 }
 0x2a8   : > { %s1930_s29 = spop.drf %1372 }
 0x2a9   : > { %p1096_p10 = scmp.le.s32.totalorder %s1930_s29, 0 }
 0x2aa   : > { %s2014_s24 = smov (!%p1096_p10), %s1924_s26  ;;  %s2015_s12 = smov (!%p1096_p10), %s1865_s21 }
 0x2ab   : > { %1028 = sbr.rel (%p1096_p10) target bundleno = 700 (0x2bc), region = 128  ;;  %s1939_s30 = smov (!%p1096_p10), 0  }
 0x2ac   : > { %s1941_s7 = smov (!%p1096_p10), 0  }
 0x2b2 LB: >> { %v912_v62 = vld [vmem:[%s1438_s12] sm:$0xff]  ;;  %v914_v2 = vld [vmem:[%s1438_s12 + $0x8] sm:$0xff]  ;;  %v916_v6 = vld [vmem:[%s1438_s12 + $0x10] sm:$0xff]  ;;  %s938_s8 = sadd.s32 1, %s1442_s30  ;;  %s906_s7 = sadd.s32 1, %s1446_s7   ;;  %s1446_s7 = sphi %s1941_s7, %s906_s7   ;;  %s1442_s30 = sphi %s1939_s30, %s2016_s30   ;;  %s1438_s12 = sphi %s2015_s12, %s943_s12   ;;  %s1434_s24 = sphi %s2014_s24, %s944_s24  }
 0x2b3   : >> { %913 = vst [vmem:[%s1434_s24] sm:$0xff] %v912_v62  ;;  %915 = vst [vmem:[%s1434_s24 + $0x8] sm:$0xff] %v914_v2  ;;  %v918_v34 = vld [vmem:[%s1438_s12 + $0x18] sm:$0xff]  ;;  %v920_v44 = vld [vmem:[%s1438_s12 + $0x20] sm:$0xff]  ;;  %p939_p11 = scmp.ge.s32.totalorder %s938_s8, %s1930_s29  ;;  %p905_p12 = scmp.ge.s32.totalorder %s906_s7, %s1930_s29 }
 0x2b4   : >> { %917 = vst [vmem:[%s1434_s24 + $0x10] sm:$0xff] %v916_v6  ;;  %v922_v45 = vld [vmem:[%s1438_s12 + $0x28] sm:$0xff]  ;;  %919 = vst [vmem:[%s1434_s24 + $0x18] sm:$0xff] %v918_v34  ;;  %v924_v48 = vld [vmem:[%s1438_s12 + $0x30] sm:$0xff] }
 0x2b5   : >> { %921 = vst [vmem:[%s1434_s24 + $0x20] sm:$0xff] %v920_v44  ;;  %923 = vst [vmem:[%s1434_s24 + $0x28] sm:$0xff] %v922_v45  ;;  %v926_v49 = vld [vmem:[%s1438_s12 + $0x38] sm:$0xff]  ;;  %v928_v7 = vld [vmem:[%s1438_s12 + $0x40] sm:$0xff]  ;;  %s2023_s8 = smov (%p939_p11, %s938_s8), 0  ;;  %908 = sbr.rel (!%p905_p12) target bundleno = 690 (0x2b2), region = 134 }
 0x2b6   : >> { %925 = vst [vmem:[%s1434_s24 + $0x30] sm:$0xff] %v924_v48  ;;  %927 = vst [vmem:[%s1434_s24 + $0x38] sm:$0xff] %v926_v49  ;;  %v930_v23 = vld [vmem:[%s1438_s12 + $0x48] sm:$0xff]  ;;  %v932_v51 = vld [vmem:[%s1438_s12 + $0x50] sm:$0xff]  ;;  %s941_s18 = smul.u32 104, %s2023_s8  ;;  %s2016_s30 = smov %s2023_s8 }
 0x2b7   : >> { %929 = vst [vmem:[%s1434_s24 + $0x40] sm:$0xff] %v928_v7  ;;  %v934_v53 = vld [vmem:[%s1438_s12 + $0x58] sm:$0xff]  ;;  %931 = vst [vmem:[%s1434_s24 + $0x48] sm:$0xff] %v930_v23  ;;  %v936_v52 = vld [vmem:[%s1438_s12 + $0x60] sm:$0xff] }
 0x2b8   : >> { %933 = vst [vmem:[%s1434_s24 + $0x50] sm:$0xff] %v932_v51  ;;  %935 = vst [vmem:[%s1434_s24 + $0x58] sm:$0xff] %v934_v53  ;;  %s943_s12 = scalar_lea.vmem %s1865_s21, %s941_s18 [#allocation2]  }
 0x2b9   : >> { %937 = vst [vmem:[%s1434_s24 + $0x60] sm:$0xff] %v936_v52  ;;  %s944_s24 = scalar_lea.vmem %s1924_s26, %s941_s18  }
 0x2bc PF: > { %1374 = sdivrem.u32 %s2021_s17, 13 }
 0x2bd   : > { %s1097_s9 = smul.u32 104, %s1930_s29 }
 0x2bf   : > { %s949_s10 = scalar_lea.vmem %s1865_s21, %s1097_s9 [#allocation2]   ;;  %s951_s11 = scalar_lea.vmem %s1924_s26, %s1097_s9  }
 0x2c5   : > { %s1375_s13 = spop.drf %1374 }
 0x2c6   : > { %p1099_p13 = scmp.le.s32.totalorder %s1375_s13, 0 }
 0x2c7   : > { %s1448_s14 = smov (!%p1099_p13), %s951_s11   ;;  %s1452_s15 = smov (!%p1099_p13), %s949_s10  }
 0x2c8   : > { %1042 = sbr.rel (%p1099_p13) target bundleno = 729 (0x2d9), region = 139  ;;  %s1456_s16 = smov (!%p1099_p13), 0  }
 0x2c9   : > { %s1460_s19 = smov (!%p1099_p13), 0  }
 0x2cf LB: >> { %v961_v54 = vld [vmem:[%s1454_s15] sm:$0xff]  ;;  %s963_s20 = sadd.s32 1, %s1458_s16  ;;  %s955_s19 = sadd.s32 1, %s1462_s19   ;;  %s1462_s19 = sphi %s1460_s19, %s955_s19   ;;  %s1458_s16 = sphi %s1456_s16, %s1457_s16   ;;  %s1454_s15 = sphi %s1452_s15, %s968_s15   ;;  %s1450_s14 = sphi %s1448_s14, %s969_s14  }
 0x2d0   : >> { %962 = vst [vmem:[%s1450_s14] sm:$0xff] %v961_v54  ;;  %p964_p0 = scmp.ge.s32.totalorder %s963_s20, %s1375_s13  ;;  %p954_p1 = scmp.ge.s32.totalorder %s955_s19, %s1375_s13 }
 0x2d2   : >> { %s2025_s20 = smov (%p964_p0, %s963_s20), 0  ;;  %957 = sbr.rel (!%p954_p1) target bundleno = 719 (0x2cf), region = 145 }
 0x2d3   : >> { %s1100_s21 = sshll.u32 %s2025_s20, 3  ;;  %s1457_s16 = smov %s2025_s20  }
 0x2d4   : >> { %s968_s15 = scalar_lea.vmem %s949_s10, %s1100_s21 [#allocation2]   ;;  %s969_s14 = scalar_lea.vmem %s951_s11, %s1100_s21  }
 0x2d9 PF: > { %p13_p2 = scmp.ge.s32.totalorder %s1517_s25, 4   ;;  %s2017_s21 = smov %s1426_s22 }
 0x2da   : > { %s2018_s22 = smov %s1525_s28  ;;  %s2019_s23 = smov %s1517_s25 }
 0x2db   :  { %15 = sbr.rel (!%p13_p2) target bundleno = 2 (0x2), region = 156 }

</bundles_post_ra>
